<compile_context>
chip_gen: v5e
topology: v5e:2x2
jax: 0.10.0
libtpu: 0.0.40
codegen_flags: <defaults>
</compile_context>

<pallas_src>
import jax
import jax.numpy as jnp
from jax.experimental import pallas as pl
from jax.experimental.pallas import tpu as pltpu


# Split very large copies into a few concurrent DMAs (helps hide per-descriptor
# latency and lets the DMA engines overlap); never bother below ~4 MiB/chunk.
_MIN_BYTES_PER_DMA = 4 * 1024 * 1024
_MAX_DMAS = 4


def _single_dma_kernel(x_ref, o_ref, sem):
    """Whole-array HBM -> HBM copy with a single DMA."""
    cp = pltpu.make_async_copy(x_ref, o_ref, sem.at[0])
    cp.start()
    cp.wait()


def _make_chunked_dma_kernel(chunks):
    """HBM -> HBM copy split into a few concurrent DMAs along the leading dim.

    `chunks` is a static tuple of (start, size) slices of the leading dim.
    """
    def kernel(x_ref, o_ref, sems):
        cps = []
        for i, (start, size) in enumerate(chunks):
            cp = pltpu.make_async_copy(
                x_ref.at[pl.ds(start, size)],
                o_ref.at[pl.ds(start, size)],
                sems.at[i],
            )
            cp.start()
            cps.append(cp)
        for cp in cps:
            cp.wait()
    return kernel


def _plan_chunks(shape, itemsize):
    """Static plan: None => single whole-ref DMA, else leading-dim chunks."""
    if len(shape) == 0:
        return None
    lead = shape[0]
    total_bytes = itemsize
    for d in shape:
        total_bytes *= d
    if lead < 2 or total_bytes < 2 * _MIN_BYTES_PER_DMA:
        return None
    n_chunks = int(min(_MAX_DMAS, lead, max(2, total_bytes // _MIN_BYTES_PER_DMA)))
    base, rem = divmod(lead, n_chunks)
    chunks, start = [], 0
    for i in range(n_chunks):
        size = base + (1 if i < rem else 0)
        chunks.append((start, size))
        start += size
    return tuple(chunks)


@jax.jit
def network_base_forward(x: jax.Array) -> jax.Array:
    """NetworkBase.forward(x) -> x, implemented as a direct HBM->HBM DMA."""
    if x.size == 0:
        return x  # nothing to copy

    chunks = _plan_chunks(x.shape, jnp.dtype(x.dtype).itemsize)
    if chunks is None:
        kernel = _single_dma_kernel
        scratch = [pltpu.SemaphoreType.DMA((1,))]
    else:
        kernel = _make_chunked_dma_kernel(chunks)
        scratch = [pltpu.SemaphoreType.DMA((len(chunks),))]

    return pl.pallas_call(
        kernel,
        out_shape=jax.ShapeDtypeStruct(x.shape, x.dtype),
        in_specs=[pl.BlockSpec(memory_space=pl.ANY)],
        out_specs=pl.BlockSpec(memory_space=pl.ANY),
        scratch_shapes=scratch,
    )(x)


if __name__ == "__main__":
    # NetworkBase is abstract; its only defined semantics are the identity
    # forward. There are no parameters to initialize.
    key = jax.random.PRNGKey(0)
    k0, k1, k2, k3 = jax.random.split(key, 4)

    # Small NCHW-style input (single whole-array DMA).
    x = jax.random.normal(k0, (2, 4, 16, 16), dtype=jnp.float32)
    y = jax.block_until_ready(network_base_forward(x))
    assert y.shape == x.shape and y.dtype == x.dtype
    assert bool(jnp.array_equal(y, x))

    # Larger input (8 MiB) exercising the multi-DMA chunked path.
    x_big = jax.random.normal(k1, (8, 16, 128, 128), dtype=jnp.float32)
    y_big = jax.block_until_ready(network_base_forward(x_big))
    assert bool(jnp.array_equal(y_big, x_big))

    # Totally unaligned size (no pad/slice copies required anymore).
    x_odd = jax.random.normal(k2, (3, 7, 19, 5), dtype=jnp.float32)
    y_odd = jax.block_until_ready(network_base_forward(x_odd))
    assert bool(jnp.array_equal(y_odd, x_odd))

    # Non-f32 dtype (DMA path is dtype-agnostic; no sublane-tile concerns).
    x_bf16 = jax.random.normal(k3, (2, 8, 32, 32), dtype=jnp.bfloat16)
    y_bf16 = jax.block_until_ready(network_base_forward(x_bf16))
    assert y_bf16.dtype == jnp.bfloat16
    assert bool(jnp.array_equal(y_bf16, x_bf16))

    print("KERNEL_OK")
</pallas_src>

<mosaic_0001>
module attributes {stable_mosaic.version = 11 : i64} {
  func.func @_single_dma_kernel(%arg0: memref<2x4x16x16xf32, #tpu.memory_space<any>>, %arg1: memref<2x4x16x16xf32, #tpu.memory_space<any>>, %arg2: memref<1x!tpu.dma_semaphore, #tpu.memory_space<semaphore_mem>>) attributes {dimension_semantics = [], scalar_prefetch = 0 : i64, scratch_operands = 1 : i64, tpu.core_type = #tpu.core_type<tc>} {
    %c0_i32 = arith.constant 0 : i32
    %0 = tpu.memref_slice %arg2[%c0_i32] : memref<1x!tpu.dma_semaphore, #tpu.memory_space<semaphore_mem>> -> memref<1x!tpu.dma_semaphore, #tpu.memory_space<semaphore_mem>>
    %1 = tpu.memref_squeeze %0 : memref<1x!tpu.dma_semaphore, #tpu.memory_space<semaphore_mem>> -> memref<!tpu.dma_semaphore, #tpu.memory_space<semaphore_mem>>
    tpu.enqueue_dma source(%arg0 : memref<2x4x16x16xf32, #tpu.memory_space<any>>) target(%arg1 : memref<2x4x16x16xf32, #tpu.memory_space<any>>) target_semaphore(%1 : memref<!tpu.dma_semaphore, #tpu.memory_space<semaphore_mem>>)
    %c0_i32_0 = arith.constant 0 : i32
    %2 = tpu.memref_slice %arg2[%c0_i32_0] : memref<1x!tpu.dma_semaphore, #tpu.memory_space<semaphore_mem>> -> memref<1x!tpu.dma_semaphore, #tpu.memory_space<semaphore_mem>>
    %3 = tpu.memref_squeeze %2 : memref<1x!tpu.dma_semaphore, #tpu.memory_space<semaphore_mem>> -> memref<!tpu.dma_semaphore, #tpu.memory_space<semaphore_mem>>
    tpu.wait_dma2 semaphore(%3 : memref<!tpu.dma_semaphore, #tpu.memory_space<semaphore_mem>>) src(%arg0 : memref<2x4x16x16xf32, #tpu.memory_space<any>>) dst(%arg1 : memref<2x4x16x16xf32, #tpu.memory_space<any>>)
    return
  }
}

</mosaic_0001>

<bundles_post_ra>
// kernel: network_base_forward.1
= control target key start
LH: loop header
LB: loop body
LE: loop exit
PB: predicated region body
PF: predicated region fallthrough
CT: control target
= control target key end

     0   :  { %s34_s12 = smov [#allocation2]   ;;  %s35_s13 = smov [#allocation3]   ;;  %s53_s0 = inlined_call_operand.hbm [shape: f32[2,4,16,16], index: 0, kind: input, shape index: {}]   ;;  %s54_s1 = inlined_call_operand.hbm [shape: f32[2,4,16,16], index: 1, kind: output, shape index: {}]  }
   0x1   :  { %s10_s8 = sshll.u32 %s53_s0, 4  ;;  %s12_s11 = sshll.u32 %s54_s1, 4  ;;  %s11_s8 = int_to_ptr.hbm [resolvable:$true] %s10_s8  ;;  %s13_s11 = int_to_ptr.hbm [resolvable:$true] %s12_s11 }
   0x2   :  { %s36_s14 = smov 0  }
   0x3   :  { %16 = dma.general %s11_s8, 2048, %s13_s11, %s34_s12, %s35_s13, [#allocation4], %s36_s14, 0  }
   0x4   :  { %32 = dma.done.wait [#allocation2], 2048 }
   0x5   :  { %33 = vsyncadd [#allocation2], 4294965248 }
   0x6   :  { %22 = vsyncmov [#allocation2] }
   0x9   :  { %s23_s15 = vpop.sfrf %22 }
   0xa   :  { %p28_p0 = scmp.ne.s32.totalorder %s23_s15, 0 }
   0xc   :  { %27 = shalt.err (%p28_p0)  }

</bundles_post_ra>
